<compile_context>
chip_gen: v6e
topology: v6e:2x2x1
jax: 0.10.0
libtpu: 0.0.40
codegen_flags: <defaults>
</compile_context>

<pallas_src>
import jax
import jax.numpy as jnp
from jax.experimental import pallas as pl
from jax.experimental.pallas import tpu as pltpu


# ----------------------------- Pallas kernel --------------------------------
def lstm_generator_kernel(x_ref, w_ih_ref, b_ref, w_lin_ref, b_lin_ref, out_ref):
    """Single-step LSTM cell (zero initial state, dead gates pruned) + Linear.

    x_ref:     (Bt, in_dim)   f32 noise rows
    w_ih_ref:  (in_dim, 3H)   bf16, gate order [i | o | g] (f pruned: c0 == 0)
    b_ref:     (1, 3H)        f32, fused b_ih + b_hh, same column order
    w_lin_ref: (H, out_dim)   bf16
    b_lin_ref: (1, out_dim)   f32
    out_ref:   (Bt, out_dim)  f32
    """
    H = w_lin_ref.shape[0]

    # MXU in bf16 with f32 accumulation; bias rides as a broadcast VPU add.
    gates = jnp.dot(x_ref[...].astype(jnp.bfloat16), w_ih_ref[...],
                    preferred_element_type=jnp.float32)
    gates = gates + b_ref[...]

    # [i | o] -> one contiguous sigmoid slab, [g] -> one tanh slab.
    sig = jax.nn.sigmoid(gates[:, 0:2 * H])
    g_g = jnp.tanh(gates[:, 2 * H:3 * H])
    i_g = sig[:, 0:H]
    o_g = sig[:, H:2 * H]

    # h0 == 0, c0 == 0  =>  forget gate is dead:  c = i * g,  h = o * tanh(c).
    c = i_g * g_g
    h = o_g * jnp.tanh(c)

    out = jnp.dot(h.astype(jnp.bfloat16), w_lin_ref[...],
                  preferred_element_type=jnp.float32) + b_lin_ref[...]
    out_ref[...] = out.astype(out_ref.dtype)


# ------------------------------ wrapper --------------------------------------
def lstm_generator_forward(x, params, *, block_b=None):
    B, in_dim = x.shape
    w_ih3, b3 = params["w_ih3"], params["b3"]
    w_lin, b_lin = params["w_lin_bf16"], params["b_lin"]
    H = w_lin.shape[0]
    out_dim = w_lin.shape[1]
    assert w_ih3.shape == (in_dim, 3 * H)

    # Batch tile: one block at small B; at large B use big tiles (amortize the
    # ~0.35us per-grid-step cost, >=512 rows where possible) while keeping
    # >=2 grid steps so ("parallel",) shards the batch across v7x's two TCs.
    # Always a sublane multiple of 8.
    if block_b is None:
        if B <= 256:
            block_b = B
        else:
            block_b = max(8, min(2048, (((B + 1) // 2) + 7) // 8 * 8))
    grid = (pl.cdiv(B, block_b),)

    cost = pl.CostEstimate(
        flops=2 * B * in_dim * 3 * H + 2 * B * H * out_dim,
        transcendentals=B * 4 * H,          # sigmoid(2H) + tanh(H) + tanh(c)(H)
        bytes_accessed=(4 * x.size + 2 * w_ih3.size + 4 * b3.size
                        + 2 * w_lin.size + 4 * b_lin.size + 4 * B * out_dim),
    )

    return pl.pallas_call(
        lstm_generator_kernel,
        out_shape=jax.ShapeDtypeStruct((B, out_dim), jnp.float32),
        grid_spec=pltpu.PrefetchScalarGridSpec(
            num_scalar_prefetch=0,
            grid=grid,
            in_specs=[
                pl.BlockSpec((block_b, in_dim), lambda i: (i, 0)),
                pl.BlockSpec((in_dim, 3 * H), lambda i: (0, 0)),
                pl.BlockSpec((1, 3 * H), lambda i: (0, 0)),
                pl.BlockSpec((H, out_dim), lambda i: (0, 0)),
                pl.BlockSpec((1, out_dim), lambda i: (0, 0)),
            ],
            out_specs=pl.BlockSpec((block_b, out_dim), lambda i: (i, 0)),
        ),
        compiler_params=pltpu.CompilerParams(
            dimension_semantics=("parallel",),
        ),
        cost_estimate=cost,
    )(x, w_ih3, b3, w_lin, b_lin)


# --------------------- deterministic parameter init --------------------------
def init_params(key, in_dim, hidden_dim, out_dim):
    """Mirror PyTorch default init: U(-1/sqrt(H), 1/sqrt(H)) for all params."""
    H = hidden_dim
    bound = 1.0 / jnp.sqrt(jnp.float32(H))
    ks = jax.random.split(key, 6)

    def u(k, shape):
        return jax.random.uniform(k, shape, jnp.float32, -bound, bound)

    w_ih = u(ks[0], (in_dim, 4 * H))       # input->gates, torch order (i,f,g,o)
    w_hh = u(ks[1], (H, 4 * H))            # hidden->gates (dead: h0 == 0)
    b_ih = u(ks[2], (1, 4 * H))
    b_hh = u(ks[3], (1, 4 * H))
    w_lin = u(ks[4], (H, out_dim))
    b_lin = u(ks[5], (1, out_dim))
    b = b_ih + b_hh

    # Kernel packs: prune the dead forget gate, reorder columns to [i | o | g]
    # so the transcendentals run over contiguous slabs; weights in bf16.
    def iog(a):
        return jnp.concatenate([a[:, 0:H], a[:, 3 * H:4 * H], a[:, 2 * H:3 * H]],
                               axis=1)

    return {
        # Full (unpruned) f32 params: reference validates the complete
        # LSTM-cell formula against the pruned/bf16 kernel.
        "w_ih": w_ih, "w_hh": w_hh, "b": b, "w_lin": w_lin, "b_lin": b_lin,
        # Packed kernel params.
        "w_ih3": iog(w_ih).astype(jnp.bfloat16),   # (in_dim, 3H) bf16
        "b3": iog(b),                              # (1, 3H)      f32
        "w_lin_bf16": w_lin.astype(jnp.bfloat16),  # (H, out_dim) bf16
    }


# ----------------- pure-JAX reference (full, unpruned f32 formula) -----------
def reference_forward(x, params):
    H = params["w_hh"].shape[0]
    B = x.shape[0]
    h0 = jnp.zeros((B, H), jnp.float32)
    c0 = jnp.zeros((B, H), jnp.float32)
    gates = x @ params["w_ih"] + h0 @ params["w_hh"] + params["b"]
    i_g = jax.nn.sigmoid(gates[:, 0 * H:1 * H])
    f_g = jax.nn.sigmoid(gates[:, 1 * H:2 * H])
    g_g = jnp.tanh(gates[:, 2 * H:3 * H])
    o_g = jax.nn.sigmoid(gates[:, 3 * H:4 * H])
    c = f_g * c0 + i_g * g_g
    h = o_g * jnp.tanh(c)
    return h @ params["w_lin"] + params["b_lin"]


if __name__ == "__main__":
    # Shapes consistent with the module's effective forward:
    # noise (B, in_dim) -> output (B, out_dim).
    B, IN_DIM, HIDDEN, OUT_DIM = 8, 16, 32, 16

    key = jax.random.PRNGKey(0)
    k_x, k_p, k_x2 = jax.random.split(key, 3)
    params = init_params(k_p, IN_DIM, HIDDEN, OUT_DIM)

    # Tolerance reflects bf16 matmul inputs (f32 accumulation / gate math).
    ATOL = RTOL = 5e-2

    # 1) Small single-block path.
    x = jax.random.normal(k_x, (B, IN_DIM), jnp.float32)
    out = jax.block_until_ready(lstm_generator_forward(x, params))
    ref = reference_forward(x, params)
    assert out.shape == (B, OUT_DIM)
    assert jnp.allclose(out, ref, atol=ATOL, rtol=RTOL), \
        "Pallas kernel mismatch vs reference (B=8)"

    # 2) Multi-block path with a partial last block (exercises the tiled grid
    #    and the v7x two-TC parallel sharding heuristic).
    B2 = 300
    x2 = jax.random.normal(k_x2, (B2, IN_DIM), jnp.float32)
    out2 = jax.block_until_ready(lstm_generator_forward(x2, params))
    ref2 = reference_forward(x2, params)
    assert out2.shape == (B2, OUT_DIM)
    assert jnp.allclose(out2, ref2, atol=ATOL, rtol=RTOL), \
        "Pallas kernel mismatch vs reference (B=300, multi-block)"

    print("KERNEL_OK")
</pallas_src>

<mosaic_0001>
module attributes {stable_mosaic.version = 11 : i64} {
  func.func @lstm_generator_kernel(%arg0: i32, %arg1: memref<8x16xf32, #tpu.memory_space<vmem>>, %arg2: memref<16x96xbf16, #tpu.memory_space<vmem>>, %arg3: memref<1x96xf32, #tpu.memory_space<vmem>>, %arg4: memref<32x16xbf16, #tpu.memory_space<vmem>>, %arg5: memref<1x16xf32, #tpu.memory_space<vmem>>, %arg6: memref<8x16xf32, #tpu.memory_space<vmem>>) attributes {dimension_semantics = [#tpu.dimension_semantics<parallel>], iteration_bounds = array<i64: 1>, scalar_prefetch = 0 : i64, scratch_operands = 0 : i64, tpu.core_type = #tpu.core_type<tc>, window_params = [{transform_indices = @transform_0, window_bounds = array<i64: 8, 16>}, {pipeline_mode = #tpu.pipeline_mode<synchronous>, transform_indices = @transform_1, window_bounds = array<i64: 16, 96>}, {pipeline_mode = #tpu.pipeline_mode<synchronous>, transform_indices = @transform_2, window_bounds = array<i64: 1, 96>}, {pipeline_mode = #tpu.pipeline_mode<synchronous>, transform_indices = @transform_3, window_bounds = array<i64: 32, 16>}, {pipeline_mode = #tpu.pipeline_mode<synchronous>, transform_indices = @transform_4, window_bounds = array<i64: 1, 16>}, {transform_indices = @transform_5, window_bounds = array<i64: 8, 16>}]} {
    %c0 = arith.constant 0 : index
    %c0_0 = arith.constant 0 : index
    %0 = vector.load %arg1[%c0, %c0_0] : memref<8x16xf32, #tpu.memory_space<vmem>>, vector<8x16xf32>
    %1 = arith.truncf %0 : vector<8x16xf32> to vector<8x16xbf16>
    %c0_1 = arith.constant 0 : index
    %c0_2 = arith.constant 0 : index
    %2 = vector.load %arg2[%c0_1, %c0_2] : memref<16x96xbf16, #tpu.memory_space<vmem>>, vector<16x96xbf16>
    %cst = arith.constant dense<0.000000e+00> : vector<8x96xf32>
    %3 = tpu.matmul %1, %2, %cst {dimension_numbers = #tpu.dot_dimension_numbers<[1], [0], [0], [1], [0, 0, 1, 1], [], []>} : vector<8x16xbf16>, vector<16x96xbf16>, vector<8x96xf32> -> vector<8x96xf32>
    %c0_3 = arith.constant 0 : index
    %c0_4 = arith.constant 0 : index
    %4 = vector.load %arg3[%c0_3, %c0_4] : memref<1x96xf32, #tpu.memory_space<vmem>>, vector<1x96xf32>
    %5 = vector.broadcast %4 : vector<1x96xf32> to vector<8x96xf32>
    %6 = arith.addf %3, %5 : vector<8x96xf32>
    %7 = vector.extract_strided_slice %6 {offsets = [0, 0], sizes = [8, 64], strides = [1, 1]} : vector<8x96xf32> to vector<8x64xf32>
    %8 = arith.negf %7 : vector<8x64xf32>
    %9 = math.exp %8 : vector<8x64xf32>
    %cst_5 = arith.constant 1.000000e+00 : f32
    %10 = vector.broadcast %cst_5 : f32 to vector<8x64xf32>
    %11 = arith.addf %10, %9 : vector<8x64xf32>
    %12 = arith.divf %10, %11 : vector<8x64xf32>
    %13 = vector.extract_strided_slice %6 {offsets = [0, 64], sizes = [8, 32], strides = [1, 1]} : vector<8x96xf32> to vector<8x32xf32>
    %14 = math.tanh %13 : vector<8x32xf32>
    %15 = vector.extract_strided_slice %12 {offsets = [0, 0], sizes = [8, 32], strides = [1, 1]} : vector<8x64xf32> to vector<8x32xf32>
    %16 = vector.extract_strided_slice %12 {offsets = [0, 32], sizes = [8, 32], strides = [1, 1]} : vector<8x64xf32> to vector<8x32xf32>
    %17 = arith.mulf %15, %14 : vector<8x32xf32>
    %18 = math.tanh %17 : vector<8x32xf32>
    %19 = arith.mulf %16, %18 : vector<8x32xf32>
    %20 = arith.truncf %19 : vector<8x32xf32> to vector<8x32xbf16>
    %c0_6 = arith.constant 0 : index
    %c0_7 = arith.constant 0 : index
    %21 = vector.load %arg4[%c0_6, %c0_7] : memref<32x16xbf16, #tpu.memory_space<vmem>>, vector<32x16xbf16>
    %cst_8 = arith.constant dense<0.000000e+00> : vector<8x16xf32>
    %22 = tpu.matmul %20, %21, %cst_8 {dimension_numbers = #tpu.dot_dimension_numbers<[1], [0], [0], [1], [0, 0, 1, 1], [], []>} : vector<8x32xbf16>, vector<32x16xbf16>, vector<8x16xf32> -> vector<8x16xf32>
    %c0_9 = arith.constant 0 : index
    %c0_10 = arith.constant 0 : index
    %23 = vector.load %arg5[%c0_9, %c0_10] : memref<1x16xf32, #tpu.memory_space<vmem>>, vector<1x16xf32>
    %24 = vector.broadcast %23 : vector<1x16xf32> to vector<8x16xf32>
    %25 = arith.addf %22, %24 : vector<8x16xf32>
    %c0_11 = arith.constant 0 : index
    %c0_12 = arith.constant 0 : index
    %26 = vector.load %arg6[%c0_11, %c0_12] : memref<8x16xf32, #tpu.memory_space<vmem>>, vector<8x16xf32>
    tpu.vector_store %arg6[%c0_11, %c0_12], %25 {strides = array<i32>} : memref<8x16xf32, #tpu.memory_space<vmem>>, vector<8x16xf32>,
    return
  }
  func.func @transform_0(%arg0: i32) -> (i32, i32) {
    %c0_i32 = arith.constant 0 : i32
    %c0_i32_0 = arith.constant 0 : i32
    return %arg0, %c0_i32 : i32, i32
  }
  func.func @transform_1(%arg0: i32) -> (i32, i32) {
    %c0_i32 = arith.constant 0 : i32
    %c0_i32_0 = arith.constant 0 : i32
    %c0_i32_1 = arith.constant 0 : i32
    return %c0_i32, %c0_i32_0 : i32, i32
  }
  func.func @transform_2(%arg0: i32) -> (i32, i32) {
    %c0_i32 = arith.constant 0 : i32
    %c0_i32_0 = arith.constant 0 : i32
    %c0_i32_1 = arith.constant 0 : i32
    return %c0_i32, %c0_i32_0 : i32, i32
  }
  func.func @transform_3(%arg0: i32) -> (i32, i32) {
    %c0_i32 = arith.constant 0 : i32
    %c0_i32_0 = arith.constant 0 : i32
    %c0_i32_1 = arith.constant 0 : i32
    return %c0_i32, %c0_i32_0 : i32, i32
  }
  func.func @transform_4(%arg0: i32) -> (i32, i32) {
    %c0_i32 = arith.constant 0 : i32
    %c0_i32_0 = arith.constant 0 : i32
    %c0_i32_1 = arith.constant 0 : i32
    return %c0_i32, %c0_i32_0 : i32, i32
  }
  func.func @transform_5(%arg0: i32) -> (i32, i32) {
    %c0_i32 = arith.constant 0 : i32
    %c0_i32_0 = arith.constant 0 : i32
    return %arg0, %c0_i32 : i32, i32
  }
}

</mosaic_0001>

<bundles_post_ra>
// kernel: tpu_custom_call.1
= control target key start
LH: loop header
LB: loop body
LE: loop exit
PB: predicated region body
PF: predicated region fallthrough
CT: control target
= control target key end

     0   :  { %v253_v1 = vmov 0.0   ;;  %vm39_vm0 = vcmask 130048   ;;  %vm254_vm1 = vmmov 0   ;;  %s312_s0 = inlined_call_operand.vmem [shape: f32[8,16], index: 0, kind: input, shape index: {}]   ;;  %s313_s1 = inlined_call_operand.vmem [shape: bf16[16,96], index: 1, kind: input, shape index: {}]   ;;  %s314_s2 = inlined_call_operand.vmem [shape: f32[1,96], index: 2, kind: input, shape index: {}]   ;;  %s315_s3 = inlined_call_operand.vmem [shape: bf16[32,16], index: 3, kind: input, shape index: {}]   ;;  %s316_s4 = inlined_call_operand.vmem [shape: f32[1,16], index: 4, kind: input, shape index: {}]   ;;  %s317_s5 = inlined_call_operand.hbm [shape: f32[8,16], index: 5, kind: output, shape index: {}]  }
   0x1   :  { %v220_v0 = vld [vmem:[%s313_s1] sm:$0xff]   ;;  %200 = vmatprep.subr.bf16.mxu0 %v253_v1  ;;  %206 = vmatprep.subr.bf16.mxu1 %v253_v1 }
   0x2   :  { %v22_v2 = vld [vmem:[%s312_s0] sm:$0xff]  ;;  %201 = vmatpush3.bf16.msra.mxu0 %v220_v0  ;;  %202 = vmatprep.mubr.msk.bf16.mxu0 %vm254_vm1, %v253_v1 }
   0x3   :  { %v23_v3 = vpack.c.bf16 %v22_v2, %v22_v2  ;;  %210 = vmatprep.mubr.msk.bf16.mxu1 %vm254_vm1, %v253_v1 }
   0x4   :  { %10 = vsyncpa [#allocation3], 0  ;;  %v187_v4 = vld [vmem:[%s314_s2] ss:$0 sm:$0xff]  ;;  %s255_s0 = smov 64   ;;  %v221_v17 = vld [vmem:[%s315_s3 + $0x8] sm:$0xff]  }
   0x5   :  { %203 = vmatmul.mubr.msk.bf16.vlgmr.msra.gmra.mxu0 %vm39_vm0, %v23_v3  ;;  %207 = vmatpush3.bf16.msra.mxu1 %v221_v17  ;;  %v222_v18 = vld [vmem:[%s315_s3] sm:$0xff]   ;;  %s256_s26 = smov 32   ;;  %s257_s27 = smov 96   ;;  %vm128_vm2 = vcmask 261120  }
   0x6   :  { %208 = vmatprep.subr.bf16.mxu1 %v253_v1  ;;  %v191_v24 = vld [vmem:[%s316_s4] ss:$0 sm:$0xff]  ;;  %s258_s30 = smov [#allocation2]  }
   0x7   :  { %s179_s6 = sshll.u32 %s258_s30, 4  ;;  %s180_s6 = int_to_ptr.vmem [resolvable:$true] %s179_s6 }
   0x8   :  { %s231_s3 = scalar_lea.vmem %s180_s6, 128  ;;  %p236_p1 = scmp.lt.s32.totalorder %s180_s6, %s180_s6 }
   0x9   :  { %209 = vmatpush3.bf16.msra.mxu1 %v222_v18  ;;  %p232_p0 = scmp.ne.s32.totalorder %s180_s6, %s231_s3  ;;  %p237_p2 = scmp.lt.s32.totalorder %s231_s3, %s231_s3 }
   0xb   :  { %p238_p3 = por %p237_p2, %p236_p1 }
   0xd   :  { %p239_p4 = pnand %p238_p3, %p232_p0 }
  0xc5   :  { %v77_v5 = vpop.f32.mrf.mxu0 }
  0xc6   :  { %v78_v6 = vadd.f32 %v187_v4, %v77_v5 }
  0xc7   :  { %v204_v7 = vpop.f32.mrf.mxu0 }
  0xc8   :  { %223 = vtanh.f32 %v78_v6  ;;  %v190_v11 = vmul.f32 -1.442695, %v78_v6 }
  0xc9   :  { %v80_v8 = vpop.f32.mrf.mxu0 }
  0xca   :  { %225 = vpow2.f32 %v190_v11 }
  0xcb   :  { %v205_v9 = vpop.f32.mrf.mxu0 }
  0xd5   :  { %v224_v10 = vpop.eup %223 }
  0xd6   :  { %91 = vrot.lane.b32.xlu0 %v224_v10, %s255_s0 }
  0xd7   :  { %v226_v12 = vpop.eup %225 }
  0xd8   :  { %v86_v13 = vadd.f32 1.0, %v226_v12 }
  0xda   :  { %227 = vrcp.f32 %v86_v13 }
  0xe7   :  { %v228_v14 = vpop.eup %227 }
 0x148   :  { %v92_v15 = vpop.permute.xlu0 %91 }
 0x149   :  { %v94_v16 = vmul.f32 %v228_v14, %v92_v15 }
 0x14b   :  { %229 = vtanh.f32 %v94_v16 }
 0x158   :  { %v230_v19 = vpop.eup %229 }
 0x159   :  { %97 = vrot.lane.b32.xlu0 %v230_v19, %s256_s26 }
 0x1cb   :  { %v98_v20 = vpop.permute.xlu0 %97 }
 0x1cc   :  { %v100_v21 = vmul.f32 %v228_v14, %v98_v20 }
 0x1ce   :  { %v101_v22 = vpack.c.bf16 %v100_v21, %v100_v21 }
 0x1d0   :  { %114 = vrot.lane.b32.xlu1 %v101_v22, %s257_s27 }
 0x242   :  { %v115_v23 = vpop.permute.xlu1 %114 }
 0x243   :  { %211 = vmatmul.mubr.msk.bf16.vlgmr.msra.gmra.mxu1 %vm128_vm2, %v115_v23 }
 0x303   :  { %v166_v25 = vpop.f32.mrf.mxu1 }
 0x304   :  { %v167_v26 = vadd.f32 %v191_v24, %v166_v25 }
 0x305   :  { %v212_v27 = vpop.f32.mrf.mxu1 }
 0x306   :  { %172 = vst.msk [vmem:[#allocation2] sm:$0xff] %vm39_vm0, %v167_v26 }
 0x307   :  { %v169_v28 = vpop.f32.mrf.mxu1 }
 0x308   :  { %242 = shalt.err (!%p239_p4)
}
 0x309   :  { %182 = dma.vmem_to_hbm [thread:$0]  %s180_s6, 128, %s317_s5, [#allocation3]   ;;  %v213_v29 = vpop.f32.mrf.mxu1 }
 0x30a   :  { %251 = dma.done.wait [#allocation3], 128  }
 0x30b   :  { %252 = vsyncadd [#allocation3], 4294967168 }
 0x30c   :  { %186 = vsyncpa [#allocation3], 1 }

</bundles_post_ra>
